<compile_context>
chip_gen: v7x
topology: tpu7x:2x2x1
jax: 0.10.0
libtpu: 0.0.40
codegen_flags: <defaults>
</compile_context>

<pallas_src>
import jax
import jax.numpy as jnp
from jax.experimental import pallas as pl
from jax.experimental.pallas import tpu as pltpu


def _round_up(x: int, m: int) -> int:
    return ((x + m - 1) // m) * m


def unimodal_kernel(
    feat_ref,            # (TB, T, D)      feature tile
    w1_ref, b1_ref,      # (D, 768) bf16, (1, 768) f32   -- BN + 1/T folded in
    w2_ref, b2_ref,      # (768, 256) bf16, (1, 256) f32
    w34_ref, b34_ref,    # (256, C_pad) bf16, (1, C_pad) f32  -- fused output head
    out_ref,             # (TB, C_pad) f32
):
    # Sum over the sequence axis (the 1/T of the mean lives inside w1).
    x = feat_ref[...].astype(jnp.float32)                       # (TB, T, D)
    h = jnp.sum(x, axis=1)                                      # (TB, D)

    # Linear(D, 768) with BatchNorm1d(eval) folded in, then ReLU. Dropout = identity.
    h = jnp.dot(h.astype(jnp.bfloat16), w1_ref[...],
                preferred_element_type=jnp.float32) + b1_ref[...]
    h = jnp.maximum(h, 0.0)

    # Linear(768, 256)
    h = jnp.dot(h.astype(jnp.bfloat16), w2_ref[...],
                preferred_element_type=jnp.float32) + b2_ref[...]

    # Fused Linear(256,128) -> Linear(128, C): single matmul against w3 @ w4.
    h = jnp.dot(h.astype(jnp.bfloat16), w34_ref[...],
                preferred_element_type=jnp.float32) + b34_ref[...]

    out_ref[...] = h.astype(out_ref.dtype)


def _fold_params(params, T):
    """Wrapper-side algebra: fold BN (eval) + 1/T into w1/b1, fuse w3@w4, pad C to 128."""
    eps = 1e-5
    scale = params["bn_gamma"] * jax.lax.rsqrt(params["bn_rv"] + eps)      # (1, 768)
    w1 = (params["w1"] * scale) / float(T)                                 # (D, 768)
    b1 = (params["b1"] - params["bn_rm"]) * scale + params["bn_beta"]      # (1, 768)

    w34 = params["w3"] @ params["w4"]                                      # (256, C)
    b34 = params["b3"] @ params["w4"] + params["b4"]                       # (1, C)

    C = w34.shape[1]
    C_pad = _round_up(C, 128)
    if C_pad != C:
        w34 = jnp.pad(w34, ((0, 0), (0, C_pad - C)))
        b34 = jnp.pad(b34, ((0, 0), (0, C_pad - C)))

    return (
        w1.astype(jnp.bfloat16), b1.astype(jnp.float32),
        params["w2"].astype(jnp.bfloat16), params["b2"].astype(jnp.float32),
        w34.astype(jnp.bfloat16), b34.astype(jnp.float32),
        C, C_pad,
    )


def unimodal_baseline_forward(audio_feat, video_feat, params, modality, *, tb=128):
    """Pallas forward for UnimodalBaseline (eval mode). Glue in JAX, compute in kernel."""
    features = audio_feat if modality == "audio" else video_feat
    B, T, D = features.shape

    w1, b1, w2, b2, w34, b34, C, C_pad = _fold_params(params, T)

    # Batch tile: multiple of 8 (sublane), capped at `tb`; pad B up to a full tile.
    TB = min(tb, _round_up(B, 8))
    B_pad = _round_up(B, TB)
    if B_pad != B:
        features = jnp.pad(features, ((0, B_pad - B), (0, 0), (0, 0)))

    grid = (B_pad // TB,)

    out = pl.pallas_call(
        unimodal_kernel,
        out_shape=jax.ShapeDtypeStruct((B_pad, C_pad), jnp.float32),
        grid=grid,
        in_specs=[
            pl.BlockSpec((TB, T, D), lambda i: (i, 0, 0)),    # feature tiles pipeline over B
            pl.BlockSpec(w1.shape, lambda i: (0, 0)),         # weights stay resident
            pl.BlockSpec(b1.shape, lambda i: (0, 0)),
            pl.BlockSpec(w2.shape, lambda i: (0, 0)),
            pl.BlockSpec(b2.shape, lambda i: (0, 0)),
            pl.BlockSpec(w34.shape, lambda i: (0, 0)),
            pl.BlockSpec(b34.shape, lambda i: (0, 0)),
        ],
        out_specs=pl.BlockSpec((TB, C_pad), lambda i: (i, 0)),
        compiler_params=pltpu.CompilerParams(
            dimension_semantics=("parallel",)),               # 2-TC sharding on v7x
    )(features, w1, b1, w2, b2, w34, b34)

    # Strip batch / lane padding.
    return out[:B, :C]


def init_params(key, embd_dim, num_classes):
    """Deterministic synthetic parameters matching the PyTorch module shapes."""
    ks = jax.random.split(key, 8)

    def lin(k, d_in, d_out):
        bound = 1.0 / jnp.sqrt(d_in)
        kw, kb = jax.random.split(k)
        w = jax.random.uniform(kw, (d_in, d_out), jnp.float32, -bound, bound)
        b = jax.random.uniform(kb, (1, d_out), jnp.float32, -bound, bound)
        return w, b

    w1, b1 = lin(ks[0], embd_dim, 768)
    w2, b2 = lin(ks[1], 768, 256)
    w3, b3 = lin(ks[2], 256, 128)
    w4, b4 = lin(ks[3], 128, num_classes)

    # BatchNorm1d(768): affine params + running stats (eval mode).
    bn_gamma = jax.random.uniform(ks[4], (1, 768), jnp.float32, 0.5, 1.5)
    bn_beta = jax.random.uniform(ks[5], (1, 768), jnp.float32, -0.1, 0.1)
    bn_rm = jax.random.uniform(ks[6], (1, 768), jnp.float32, -0.2, 0.2)
    bn_rv = jax.random.uniform(ks[7], (1, 768), jnp.float32, 0.8, 1.2)

    return dict(
        w1=w1, b1=b1, w2=w2, b2=b2, w3=w3, b3=b3, w4=w4, b4=b4,
        bn_gamma=bn_gamma, bn_beta=bn_beta, bn_rm=bn_rm, bn_rv=bn_rv,
    )


def reference_forward(audio_feat, video_feat, params, modality):
    """Pure-JAX f32 reference of the PyTorch forward (eval mode, unfused params)."""
    features = audio_feat if modality == "audio" else video_feat
    h = jnp.mean(features.astype(jnp.float32), axis=1)
    h = h @ params["w1"] + params["b1"]
    h = (h - params["bn_rm"]) / jnp.sqrt(params["bn_rv"] + 1e-5)
    h = h * params["bn_gamma"] + params["bn_beta"]
    h = jnp.maximum(h, 0.0)
    h = h @ params["w2"] + params["b2"]
    h = h @ params["w3"] + params["b3"]
    return h @ params["w4"] + params["b4"]


if __name__ == "__main__":
    key = jax.random.PRNGKey(0)
    k_a, k_v, k_p = jax.random.split(key, 3)

    # Small, module-consistent shapes.
    B, T = 2, 8
    audio_emb_dim, video_emb_dim, num_classes = 128, 256, 10
    modality = "audio"

    audio_feat = jax.random.normal(k_a, (B, T, audio_emb_dim), jnp.float32)
    video_feat = jax.random.normal(k_v, (B, T, video_emb_dim), jnp.float32)

    embd_dim = audio_emb_dim if modality == "audio" else video_emb_dim
    params = init_params(k_p, embd_dim, num_classes)

    out = unimodal_baseline_forward(audio_feat, video_feat, params, modality)
    out = jax.block_until_ready(out)

    ref = reference_forward(audio_feat, video_feat, params, modality)
    assert out.shape == (B, num_classes)
    # bf16 weights + BN/head fusion change rounding slightly -> loosened tolerance.
    assert jnp.allclose(out, ref, atol=5e-2, rtol=5e-2), "mismatch vs reference"

    print("KERNEL_OK")
</pallas_src>

<mosaic_0001>
module attributes {stable_mosaic.version = 11 : i64} {
  func.func @unimodal_kernel(%arg0: i32, %arg1: memref<8x8x128xf32, #tpu.memory_space<vmem>>, %arg2: memref<128x768xbf16, #tpu.memory_space<vmem>>, %arg3: memref<1x768xf32, #tpu.memory_space<vmem>>, %arg4: memref<768x256xbf16, #tpu.memory_space<vmem>>, %arg5: memref<1x256xf32, #tpu.memory_space<vmem>>, %arg6: memref<256x128xbf16, #tpu.memory_space<vmem>>, %arg7: memref<1x128xf32, #tpu.memory_space<vmem>>, %arg8: memref<8x128xf32, #tpu.memory_space<vmem>>) attributes {dimension_semantics = [#tpu.dimension_semantics<parallel>], iteration_bounds = array<i64: 1>, scalar_prefetch = 0 : i64, scratch_operands = 0 : i64, tpu.core_type = #tpu.core_type<tc>, window_params = [{transform_indices = @transform_0, window_bounds = array<i64: 8, 8, 128>}, {pipeline_mode = #tpu.pipeline_mode<synchronous>, transform_indices = @transform_1, window_bounds = array<i64: 128, 768>}, {pipeline_mode = #tpu.pipeline_mode<synchronous>, transform_indices = @transform_2, window_bounds = array<i64: 1, 768>}, {pipeline_mode = #tpu.pipeline_mode<synchronous>, transform_indices = @transform_3, window_bounds = array<i64: 768, 256>}, {pipeline_mode = #tpu.pipeline_mode<synchronous>, transform_indices = @transform_4, window_bounds = array<i64: 1, 256>}, {pipeline_mode = #tpu.pipeline_mode<synchronous>, transform_indices = @transform_5, window_bounds = array<i64: 256, 128>}, {pipeline_mode = #tpu.pipeline_mode<synchronous>, transform_indices = @transform_6, window_bounds = array<i64: 1, 128>}, {transform_indices = @transform_7, window_bounds = array<i64: 8, 128>}]} {
    %c0 = arith.constant 0 : index
    %c0_0 = arith.constant 0 : index
    %c0_1 = arith.constant 0 : index
    %0 = vector.load %arg1[%c0, %c0_0, %c0_1] : memref<8x8x128xf32, #tpu.memory_space<vmem>>, vector<8x8x128xf32>
    %cst = arith.constant dense<0.000000e+00> : vector<8x128xf32>
    %1 = vector.multi_reduction <add>, %0, %cst [1] : vector<8x8x128xf32> to vector<8x128xf32>
    %2 = arith.truncf %1 : vector<8x128xf32> to vector<8x128xbf16>
    %c0_2 = arith.constant 0 : index
    %c0_3 = arith.constant 0 : index
    %3 = vector.load %arg2[%c0_2, %c0_3] : memref<128x768xbf16, #tpu.memory_space<vmem>>, vector<128x768xbf16>
    %cst_4 = arith.constant dense<0.000000e+00> : vector<8x768xf32>
    %4 = tpu.matmul %2, %3, %cst_4 {dimension_numbers = #tpu.dot_dimension_numbers<[1], [0], [0], [1], [0, 0, 1, 1], [], []>} : vector<8x128xbf16>, vector<128x768xbf16>, vector<8x768xf32> -> vector<8x768xf32>
    %c0_5 = arith.constant 0 : index
    %c0_6 = arith.constant 0 : index
    %5 = vector.load %arg3[%c0_5, %c0_6] : memref<1x768xf32, #tpu.memory_space<vmem>>, vector<1x768xf32>
    %6 = vector.broadcast %5 : vector<1x768xf32> to vector<8x768xf32>
    %7 = arith.addf %4, %6 : vector<8x768xf32>
    %cst_7 = arith.constant 0.000000e+00 : f32
    %8 = vector.broadcast %cst_7 : f32 to vector<8x768xf32>
    %9 = arith.maximumf %7, %8 : vector<8x768xf32>
    %10 = arith.truncf %9 : vector<8x768xf32> to vector<8x768xbf16>
    %c0_8 = arith.constant 0 : index
    %c0_9 = arith.constant 0 : index
    %11 = vector.load %arg4[%c0_8, %c0_9] : memref<768x256xbf16, #tpu.memory_space<vmem>>, vector<768x256xbf16>
    %cst_10 = arith.constant dense<0.000000e+00> : vector<8x256xf32>
    %12 = tpu.matmul %10, %11, %cst_10 {dimension_numbers = #tpu.dot_dimension_numbers<[1], [0], [0], [1], [0, 0, 1, 1], [], []>} : vector<8x768xbf16>, vector<768x256xbf16>, vector<8x256xf32> -> vector<8x256xf32>
    %c0_11 = arith.constant 0 : index
    %c0_12 = arith.constant 0 : index
    %13 = vector.load %arg5[%c0_11, %c0_12] : memref<1x256xf32, #tpu.memory_space<vmem>>, vector<1x256xf32>
    %14 = vector.broadcast %13 : vector<1x256xf32> to vector<8x256xf32>
    %15 = arith.addf %12, %14 : vector<8x256xf32>
    %16 = arith.truncf %15 : vector<8x256xf32> to vector<8x256xbf16>
    %c0_13 = arith.constant 0 : index
    %c0_14 = arith.constant 0 : index
    %17 = vector.load %arg6[%c0_13, %c0_14] : memref<256x128xbf16, #tpu.memory_space<vmem>>, vector<256x128xbf16>
    %cst_15 = arith.constant dense<0.000000e+00> : vector<8x128xf32>
    %18 = tpu.matmul %16, %17, %cst_15 {dimension_numbers = #tpu.dot_dimension_numbers<[1], [0], [0], [1], [0, 0, 1, 1], [], []>} : vector<8x256xbf16>, vector<256x128xbf16>, vector<8x128xf32> -> vector<8x128xf32>
    %c0_16 = arith.constant 0 : index
    %c0_17 = arith.constant 0 : index
    %19 = vector.load %arg7[%c0_16, %c0_17] : memref<1x128xf32, #tpu.memory_space<vmem>>, vector<1x128xf32>
    %20 = vector.broadcast %19 : vector<1x128xf32> to vector<8x128xf32>
    %21 = arith.addf %18, %20 : vector<8x128xf32>
    %c0_18 = arith.constant 0 : index
    %c0_19 = arith.constant 0 : index
    %22 = vector.load %arg8[%c0_18, %c0_19] : memref<8x128xf32, #tpu.memory_space<vmem>>, vector<8x128xf32>
    tpu.vector_store %arg8[%c0_18, %c0_19], %21 {strides = array<i32>} : memref<8x128xf32, #tpu.memory_space<vmem>>, vector<8x128xf32>,
    return
  }
  func.func @transform_0(%arg0: i32) -> (i32, i32, i32) {
    %c0_i32 = arith.constant 0 : i32
    %c0_i32_0 = arith.constant 0 : i32
    %c0_i32_1 = arith.constant 0 : i32
    return %arg0, %c0_i32, %c0_i32_0 : i32, i32, i32
  }
  func.func @transform_1(%arg0: i32) -> (i32, i32) {
    %c0_i32 = arith.constant 0 : i32
    %c0_i32_0 = arith.constant 0 : i32
    %c0_i32_1 = arith.constant 0 : i32
    return %c0_i32, %c0_i32_0 : i32, i32
  }
  func.func @transform_2(%arg0: i32) -> (i32, i32) {
    %c0_i32 = arith.constant 0 : i32
    %c0_i32_0 = arith.constant 0 : i32
    %c0_i32_1 = arith.constant 0 : i32
    return %c0_i32, %c0_i32_0 : i32, i32
  }
  func.func @transform_3(%arg0: i32) -> (i32, i32) {
    %c0_i32 = arith.constant 0 : i32
    %c0_i32_0 = arith.constant 0 : i32
    %c0_i32_1 = arith.constant 0 : i32
    return %c0_i32, %c0_i32_0 : i32, i32
  }
  func.func @transform_4(%arg0: i32) -> (i32, i32) {
    %c0_i32 = arith.constant 0 : i32
    %c0_i32_0 = arith.constant 0 : i32
    %c0_i32_1 = arith.constant 0 : i32
    return %c0_i32, %c0_i32_0 : i32, i32
  }
  func.func @transform_5(%arg0: i32) -> (i32, i32) {
    %c0_i32 = arith.constant 0 : i32
    %c0_i32_0 = arith.constant 0 : i32
    %c0_i32_1 = arith.constant 0 : i32
    return %c0_i32, %c0_i32_0 : i32, i32
  }
  func.func @transform_6(%arg0: i32) -> (i32, i32) {
    %c0_i32 = arith.constant 0 : i32
    %c0_i32_0 = arith.constant 0 : i32
    %c0_i32_1 = arith.constant 0 : i32
    return %c0_i32, %c0_i32_0 : i32, i32
  }
  func.func @transform_7(%arg0: i32) -> (i32, i32) {
    %c0_i32 = arith.constant 0 : i32
    %c0_i32_0 = arith.constant 0 : i32
    return %arg0, %c0_i32 : i32, i32
  }
}

</mosaic_0001>

<bundles_post_ra>
// kernel: tpu_custom_call.1
= control target key start
LH: loop header
LB: loop body
LE: loop exit
PB: predicated region body
PF: predicated region fallthrough
CT: control target
= control target key end

     0   :  { %12 = vsyncpa [#allocation3], 0  ;;  %s2256_s0 = inlined_call_operand.hbm [shape: f32[8,8,128], index: 0, kind: input, shape index: {}]   ;;  %s2257_s1 = inlined_call_operand.hbm [shape: bf16[128,768], index: 1, kind: input, shape index: {}]   ;;  %s2258_s2 = inlined_call_operand.vmem [shape: f32[1,768], index: 2, kind: input, shape index: {}]   ;;  %s2259_s3 = inlined_call_operand.hbm [shape: bf16[768,256], index: 3, kind: input, shape index: {}]   ;;  %s2260_s4 = inlined_call_operand.vmem [shape: f32[1,256], index: 4, kind: input, shape index: {}]   ;;  %s2261_s5 = inlined_call_operand.hbm [shape: bf16[256,128], index: 5, kind: input, shape index: {}]   ;;  %s2262_s6 = inlined_call_operand.vmem [shape: f32[1,128], index: 6, kind: input, shape index: {}]   ;;  %s2263_s7 = inlined_call_operand.hbm [shape: f32[8,128], index: 7, kind: output, shape index: {}]  }
   0x1   :  { %13 = vsyncpa [#allocation6], 0 }
   0x2   :  { %14 = vsyncpa [#allocation9], 0 }
   0x3   :  { %15 = vsyncpa [#allocation4], 0  ;;  %s2093_s24 = smov [#allocation5]   ;;  %s1975_s28 = scalar_lea.hbm %s2257_s1, 6144 }
   0x4   :  { %s33_s25 = sshll.u32 %s2093_s24, 4  ;;  %p1976_p0 = scmp.ne.s32.totalorder %s2257_s1, %s1975_s28  ;;  %s34_s25 = int_to_ptr.vmem [resolvable:$true] %s33_s25 }
   0x5   :  { %p1979_p1 = scmp.lt.u32.totalorder %s1975_s28, %s2257_s1 }
   0x7   :  { %p1981_p2 = pnand %p1979_p1, %p1976_p0 }
   0x9   :  { %1984 = shalt.err (!%p1981_p2)
}
   0xa   :  { %s1985_s10 = scalar_lea.vmem %s34_s25, 6144  ;;  %p1990_p4 = scmp.lt.s32.totalorder %s34_s25, %s34_s25 }
   0xb   :  { %p1986_p3 = scmp.ne.s32.totalorder %s34_s25, %s1985_s10  ;;  %p1991_p5 = scmp.lt.s32.totalorder %s1985_s10, %s1985_s10 }
   0xd   :  { %p1992_p6 = por %p1991_p5, %p1990_p4 }
   0xf   :  { %p1993_p7 = pnand %p1992_p6, %p1986_p3 }
  0x11   :  { %1996 = shalt.err (!%p1993_p7)
}
  0x12   :  { %s2094_s11 = smov 384   ;;  %s2095_s12 = smov 24  }
  0x13   :  { %39 = dma.hbm_to_vmem [thread:$0]  %s2257_s1, 6144, %s34_s25, [#allocation6], %s2094_s11, %s2094_s11, %s2095_s12  }
  0x14   :  { %s2096_s15 = smov [#allocation2]   ;;  %s1997_s19 = scalar_lea.hbm %s2256_s0, 1024 }
  0x15   :  { %s21_s16 = sshll.u32 %s2096_s15, 4  ;;  %p1998_p8 = scmp.ne.s32.totalorder %s2256_s0, %s1997_s19  ;;  %s22_s16 = int_to_ptr.vmem [resolvable:$true] %s21_s16 }
  0x16   :  { %p2001_p9 = scmp.lt.u32.totalorder %s1997_s19, %s2256_s0 }
  0x18   :  { %p2003_p10 = pnand %p2001_p9, %p1998_p8 }
  0x1a   :  { %2006 = shalt.err (!%p2003_p10)
}
  0x1b   :  { %s2007_s24 = scalar_lea.vmem %s22_s16, 1024  ;;  %p2012_p12 = scmp.lt.s32.totalorder %s22_s16, %s22_s16 }
  0x1c   :  { %p2008_p11 = scmp.ne.s32.totalorder %s22_s16, %s2007_s24  ;;  %p2013_p13 = scmp.lt.s32.totalorder %s2007_s24, %s2007_s24 }
  0x1e   :  { %p2014_p0 = por %p2013_p13, %p2012_p12 }
  0x20   :  { %p2015_p1 = pnand %p2014_p0, %p2008_p11 }
  0x22   :  { %2018 = shalt.err (!%p2015_p1)
}
  0x23   :  { %s2097_s1 = smov 128   ;;  %s2098_s25 = smov 8  }
  0x24   :  { %27 = dma.hbm_to_vmem [thread:$0]  %s2256_s0, 1024, %s22_s16, [#allocation3], %s2097_s1, %s2097_s1, %s2098_s25  }
  0x25   :  { %s2099_s28 = smov [#allocation7]   ;;  %s2100_s30 = smov [#allocation8]  }
  0x26   :  { %s47_s29 = sshll.u32 %s2099_s28, 4  ;;  %s61_s8 = sshll.u32 %s2100_s30, 4  ;;  %s48_s29 = int_to_ptr.vmem [resolvable:$true] %s47_s29  ;;  %s2169_s8 = int_to_ptr.vmem [resolvable:$true] %s61_s8 }
  0x27   :  { %s2019_s11 = scalar_lea.hbm %s2259_s3, 12288 }
  0x28   :  { %p2020_p2 = scmp.ne.s32.totalorder %s2259_s3, %s2019_s11  ;;  %p2023_p3 = scmp.lt.u32.totalorder %s2019_s11, %s2259_s3 }
  0x2a   :  { %p2025_p4 = pnand %p2023_p3, %p2020_p2 }
  0x2c   :  { %2028 = shalt.err (!%p2025_p4)
}
  0x2d   :  { %s2029_s0 = scalar_lea.vmem %s48_s29, 12288  ;;  %p2034_p6 = scmp.lt.s32.totalorder %s48_s29, %s48_s29 }
  0x2e   :  { %p2030_p5 = scmp.ne.s32.totalorder %s48_s29, %s2029_s0  ;;  %p2035_p7 = scmp.lt.s32.totalorder %s2029_s0, %s2029_s0 }
  0x30   :  { %p2036_p8 = por %p2035_p7, %p2034_p6 }
  0x32   :  { %p2037_p9 = pnand %p2036_p8, %p2030_p5 }
  0x34   :  { %2040 = shalt.err (!%p2037_p9)
}
  0x35   :  { %53 = dma.hbm_to_vmem [thread:$0]  %s2259_s3, 12288, %s48_s29, [#allocation6], %s2097_s1, %s2097_s1, %s2098_s25  }
  0x36   :  { %s2041_s20 = scalar_lea.hbm %s2261_s5, 2048 }
  0x37   :  { %p2042_p10 = scmp.ne.s32.totalorder %s2261_s5, %s2041_s20  ;;  %p2045_p11 = scmp.lt.u32.totalorder %s2041_s20, %s2261_s5 }
  0x39   :  { %p2047_p12 = pnand %p2045_p11, %p2042_p10 }
  0x3b   :  { %2050 = shalt.err (!%p2047_p12)
}
  0x3c   :  { %s2051_s26 = scalar_lea.vmem %s2169_s8, 2048  ;;  %p2056_p0 = scmp.lt.s32.totalorder %s2169_s8, %s2169_s8 }
  0x3d   :  { %p2052_p13 = scmp.ne.s32.totalorder %s2169_s8, %s2051_s26  ;;  %p2057_p1 = scmp.lt.s32.totalorder %s2051_s26, %s2051_s26 }
  0x3f   :  { %p2058_p2 = por %p2057_p1, %p2056_p0 }
  0x41   :  { %p2059_p3 = pnand %p2058_p2, %p2052_p13 }
  0x43   :  { %2062 = shalt.err (!%p2059_p3)
}
  0x44   :  { %s2101_s3 = smov 64   ;;  %s2102_s1 = smov 4  }
  0x45   :  { %67 = dma.hbm_to_vmem [thread:$0]  %s2261_s5, 2048, %s2169_s8, [#allocation9], %s2101_s3, %s2101_s3, %s2102_s1  }
  0x46   :  { %2085 = dma.done.wait [#allocation3], 1024  }
  0x47   :  { %2086 = vsyncadd [#allocation3], 4294966272 }
  0x48   :  { %2087 = dma.done.wait [#allocation6], 18432  }
  0x49   :  { %2088 = vsyncadd [#allocation6], 4294948864 }
  0x4a   :  { %2089 = dma.done.wait [#allocation9], 2048  }
  0x4b   :  { %2090 = vsyncadd [#allocation9], 4294965248  ;;  %v2103_v0 = vmov 0   ;;  %v1743_v1 = vld [vmem:[#allocation5 + $0xc] ss:$24 sps:$4 sm:$0xff]   ;;  %v85_v18 = vld [vmem:[#allocation2 + $0x10] sm:$0xff] }
  0x4c   :  { %572 = vmatprep.mubr.bf16.mxu1 %v2103_v0  ;;  %531 = vmatprep.mubr.bf16.mxu0 %v2103_v0  ;;  %v1745_v2 = vld [vmem:[#allocation5 + $0x8] ss:$24 sps:$4 sm:$0xff]   ;;  %v1746_v3 = vld [vmem:[#allocation5 + $0x3c] ss:$24 sps:$4 sm:$0xff]   ;;  %v1748_v4 = vld [vmem:[#allocation5 + $0x38] ss:$24 sps:$4 sm:$0xff]  }
  0x4d   :  { %540 = vmatprep.subr.bf16.mxu1 %v1743_v1  ;;  %v1749_v5 = vld [vmem:[#allocation5 + $0x6c] ss:$24 sps:$4 sm:$0xff]   ;;  %v1751_v6 = vld [vmem:[#allocation5 + $0x68] ss:$24 sps:$4 sm:$0xff]   ;;  %v1752_v7 = vld [vmem:[#allocation5 + $0x9c] ss:$24 sps:$4 sm:$0xff]  }
  0x4e   :  { %541 = vmatpush1.bf16.msra.mxu1 %v1745_v2  ;;  %v1764_v8 = vld [vmem:[#allocation5 + $0x4] ss:$24 sps:$4 sm:$0xff]   ;;  %v1766_v9 = vld [vmem:[#allocation5] ss:$24 sps:$4 sm:$0xff]   ;;  %v1770_v12 = vld [vmem:[#allocation5 + $0x34] ss:$24 sps:$4 sm:$0xff]  }
  0x4f   :  { %542 = vmatprep.subr.bf16.mxu1 %v1746_v3  ;;  %v1754_v10 = vld [vmem:[#allocation5 + $0x98] ss:$24 sps:$4 sm:$0xff]   ;;  %v1755_v11 = vld [vmem:[#allocation5 + $0xcc] ss:$24 sps:$4 sm:$0xff]   ;;  %499 = vmatprep.subr.bf16.mxu0 %v1764_v8  ;;  %v1757_v13 = vld [vmem:[#allocation5 + $0xc8] ss:$24 sps:$4 sm:$0xff]  }
  0x50   :  { %500 = vmatpush1.bf16.msra.mxu0 %v1766_v9  ;;  %v1772_v14 = vld [vmem:[#allocation5 + $0x30] ss:$24 sps:$4 sm:$0xff]   ;;  %v83_v15 = vld [vmem:[#allocation2] sm:$0xff]  ;;  %v1758_v17 = vld [vmem:[#allocation5 + $0xfc] ss:$24 sps:$4 sm:$0xff]   ;;  %v103_v26 = vrot.slane %v85_v18, 4 }
  0x51   :  { %v84_v16 = vld [vmem:[#allocation2 + $0x8] sm:$0xff]  ;;  %501 = vmatprep.subr.bf16.mxu0 %v1770_v12  ;;  %v86_v19 = vld [vmem:[#allocation2 + $0x18] sm:$0xff]  ;;  %v87_v20 = vld [vmem:[#allocation2 + $0x20] sm:$0xff]  ;;  %v91_v21 = vrot.slane %v83_v15, 4  ;;  %vm243_vm0 = vcmask 1041409   ;;  %vm245_vm1 = vcmask 1042434  }
  0x52   :  { %543 = vmatpush1.bf16.msra.mxu1 %v1748_v4  ;;  %v97_v22 = vrot.slane %v84_v16, 4  ;;  %v88_v23 = vld [vmem:[#allocation2 + $0x28] sm:$0xff]  ;;  %v89_v24 = vld [vmem:[#allocation2 + $0x30] sm:$0xff]  ;;  %v90_v25 = vld [vmem:[#allocation2 + $0x38] sm:$0xff]  ;;  %v109_v27 = vrot.slane %v86_v19, 4  ;;  %v115_v28 = vrot.slane %v87_v20, 4  ;;  %v104_v34 = vadd.f32 %v103_v26, %v85_v18 }
  0x53   :  { %544 = vmatprep.subr.bf16.mxu1 %v1749_v5  ;;  %v92_v29 = vadd.f32 %v91_v21, %v83_v15  ;;  %v121_v31 = vrot.slane %v88_v23, 4  ;;  %v127_v32 = vrot.slane %v89_v24, 4  ;;  %v1773_v33 = vld [vmem:[#allocation5 + $0x64] ss:$24 sps:$4 sm:$0xff]   ;;  %v133_v37 = vrot.slane %v90_v25, 4  ;;  %s2104_s8 = smov [#allocation10]  }
  0x54   :  { %v98_v30 = vadd.f32 %v97_v22, %v84_v16  ;;  %502 = vmatpush1.bf16.msra.mxu0 %v1772_v14  ;;  %v110_v35 = vadd.f32 %v109_v27, %v86_v19  ;;  %v116_v36 = vadd.f32 %v115_v28, %v87_v20  ;;  %v1775_v38 = vld [vmem:[#allocation5 + $0x60] ss:$24 sps:$4 sm:$0xff]   ;;  %v1776_v44 = vld [vmem:[#allocation5 + $0x94] ss:$24 sps:$4 sm:$0xff]   ;;  %v105_v45 = vrot.slane %v104_v34, 2  ;;  %s1529_s9 = sshll.u32 %s2104_s8, 4  ;;  %s1530_s9 = int_to_ptr.vmem [resolvable:$true] %s1529_s9 }
  0x55   :  { %v1760_v39 = vld [vmem:[#allocation5 + $0xf8] ss:$24 sps:$4 sm:$0xff]   ;;  %v93_v40 = vrot.slane %v92_v29, 2  ;;  %v122_v42 = vadd.f32 %v121_v31, %v88_v23  ;;  %v128_v43 = vadd.f32 %v127_v32, %v89_v24  ;;  %503 = vmatprep.subr.bf16.mxu0 %v1773_v33  ;;  %v134_v48 = vadd.f32 %v133_v37, %v90_v25  ;;  %v1761_v49 = vld [vmem:[#allocation5 + $0x12c] ss:$24 sps:$4 sm:$0xff]   ;;  %s2063_s10 = scalar_lea.vmem %s1530_s9, 128  ;;  %p2068_p5 = scmp.lt.s32.totalorder %s1530_s9, %s1530_s9 }
  0x56   :  { %545 = vmatpush1.bf16.msra.mxu1 %v1751_v6  ;;  %v99_v41 = vrot.slane %v98_v30, 2  ;;  %v111_v46 = vrot.slane %v110_v35, 2  ;;  %v117_v47 = vrot.slane %v116_v36, 2  ;;  %v106_v54 = vadd.f32 %v105_v45, %v104_v34  ;;  %v1778_v58 = vld [vmem:[#allocation5 + $0x90] ss:$24 sps:$4 sm:$0xff]   ;;  %p2064_p4 = scmp.ne.s32.totalorder %s1530_s9, %s2063_s10  ;;  %p2069_p6 = scmp.lt.s32.totalorder %s2063_s10, %s2063_s10 }
  0x57   :  { %546 = vmatprep.subr.bf16.mxu1 %v1752_v7  ;;  %v94_v50 = vadd.f32 %v93_v40, %v92_v29  ;;  %v123_v52 = vrot.slane %v122_v42, 2  ;;  %v129_v53 = vrot.slane %v128_v43, 2  ;;  %v135_v57 = vrot.slane %v134_v48, 2  ;;  %v1779_v63 = vld [vmem:[#allocation5 + $0xc4] ss:$24 sps:$4 sm:$0xff]  }
  0x58   :  { %v100_v51 = vadd.f32 %v99_v41, %v98_v30  ;;  %v112_v55 = vadd.f32 %v111_v46, %v110_v35  ;;  %v118_v56 = vadd.f32 %v117_v47, %v116_v36  ;;  %vm247_vm2 = vcmask 1043459   ;;  %504 = vmatpush1.bf16.msra.mxu0 %v1775_v38  ;;  %v1763_v1 = vld [vmem:[#allocation5 + $0x128] ss:$24 sps:$4 sm:$0xff]   ;;  %v1767_v6 = vld [vmem:[#allocation5 + $0x15c] ss:$24 sps:$4 sm:$0xff]   ;;  %p2070_p7 = por %p2069_p6, %p2068_p5 }
  0x59   :  { %v95_v59 = vrot.slane %v94_v50, 1  ;;  %v124_v61 = vadd.f32 %v123_v52, %v122_v42  ;;  %v130_v62 = vadd.f32 %v129_v53, %v128_v43  ;;  %505 = vmatprep.subr.bf16.mxu0 %v1776_v44  ;;  %v107_v2 = vrot.slane %v106_v54, 1  ;;  %v1781_v15 = vld [vmem:[#allocation5 + $0xc0] ss:$24 sps:$4 sm:$0xff]   ;;  %v1782_v20 = vld [vmem:[#allocation5 + $0xf4] ss:$24 sps:$4 sm:$0xff]  }
  0x5a   :  { %547 = vmatpush1.bf16.msra.mxu1 %v1754_v10  ;;  %v101_v60 = vrot.slane %v100_v51, 1  ;;  %v113_v3 = vrot.slane %v112_v55, 1  ;;  %v119_v4 = vrot.slane %v118_v56, 1  ;;  %v136_v5 = vadd.f32 %v135_v57, %v134_v48  ;;  %v1769_v21 = vld [vmem:[#allocation5 + $0x158] ss:$24 sps:$4 sm:$0xff]   ;;  %p2071_p8 = pnand %p2070_p7, %p2064_p4 }
  0x5b   :  { %548 = vmatprep.subr.bf16.mxu1 %v1755_v11  ;;  %v96_v7 = vadd.f32 %v95_v59, %v94_v50  ;;  %v125_v9 = vrot.slane %v124_v61, 1  ;;  %v131_v10 = vrot.slane %v130_v62, 1  ;;  %v108_v11 = vadd.f32 %v107_v2, %v106_v54  ;;  %v1784_v34 = vld [vmem:[#allocation5 + $0xf0] ss:$24 sps:$4 sm:$0xff]   ;;  %v1785_v37 = vld [vmem:[#allocation5 + $0x124] ss:$24 sps:$4 sm:$0xff]  }
  0x5c   :  { %v102_v8 = vadd.f32 %v101_v60, %v100_v51  ;;  %v114_v12 = vadd.f32 %v113_v3, %v112_v55  ;;  %v137_v14 = vrot.slane %v136_v5, 1  ;;  %506 = vmatpush1.bf16.msra.mxu0 %v1778_v58  ;;  %vm249_vm3 = vcmask 1044484   ;;  %v1787_v43 = vld [vmem:[#allocation5 + $0x120] ss:$24 sps:$4 sm:$0xff]   ;;  %v1788_v45 = vld [vmem:[#allocation5 + $0x154] ss:$24 sps:$4 sm:$0xff]  }
  0x5d   :  { %v126_v16 = vadd.f32 %v125_v9, %v124_v61  ;;  %v139_v18 = vpack.c.bf16 %v96_v7, %v96_v7  ;;  %507 = vmatprep.subr.bf16.mxu0 %v1779_v63  ;;  %v141_v23 = vpack.c.bf16 %v108_v11, %v108_v11  ;;  %vm251_vm4 = vcmask 1045509   ;;  %v1790_v47 = vld [vmem:[#allocation5 + $0x150] ss:$24 sps:$4 sm:$0xff]   ;;  %v1817_v50 = vld [vmem:[#allocation7 + $0x104] ss:$8 sps:$4 sm:$0xff]  }
  0x5e   :  { %549 = vmatpush1.bf16.msra.mxu1 %v1757_v13  ;;  %v120_v13 = vadd.f32 %v119_v4, %v118_v56  ;;  %v140_v19 = vpack.c.bf16 %v102_v8, %v102_v8  ;;  %v138_v22 = vadd.f32 %v137_v14, %v136_v5  ;;  %v142_v24 = vpack.c.bf16 %v114_v12, %v114_v12  ;;  %v1793_v52 = vld [vmem:[#allocation5 + $0x14] ss:$24 sps:$4 sm:$0xff]   ;;  %v1791_v54 = vld [vmem:[#allocation5 + $0x10] ss:$24 sps:$4 sm:$0xff]   ;;  %v1796_v56 = vld [vmem:[#allocation5 + $0x44] ss:$24 sps:$4 sm:$0xff]  }
  0x5f   :  { %550 = vmatprep.subr.bf16.mxu1 %v1758_v17  ;;  %v132_v17 = vadd.f32 %v131_v10, %v130_v62  ;;  %v144_v26 = vpack.c.bf16 %v126_v16, %v126_v16  ;;  %v235_v28 = vunpack.c.l.b16 %v139_v18  ;;  %v237_v31 = vunpack.c.l.b16 %v141_v23  ;;  %v1820_v53 = vld [vmem:[#allocation7 + $0x114] ss:$8 sps:$4 sm:$0xff]   ;;  %v1818_v55 = vld [vmem:[#allocation7 + $0x110] ss:$8 sps:$4 sm:$0xff]   ;;  %v1823_v57 = vld [vmem:[#allocation7 + $0x124] ss:$8 sps:$4 sm:$0xff]  }
  0x60   :  { %v143_v25 = vpack.c.bf16 %v120_v13, %v120_v13  ;;  %v236_v29 = vunpack.c.l.b16 %v140_v19  ;;  %v146_v30 = vpack.c.bf16 %v138_v22, %v138_v22  ;;  %v238_v32 = vunpack.c.l.b16 %v142_v24  ;;  %508 = vmatpush1.bf16.msra.mxu0 %v1781_v15  ;;  %v1794_v58 = vld [vmem:[#allocation5 + $0x40] ss:$24 sps:$4 sm:$0xff]   ;;  %v1826_v60 = vld [vmem:[#allocation7 + $0x134] ss:$8 sps:$4 sm:$0xff]   ;;  %v1797_v62 = vld [vmem:[#allocation5 + $0x70] ss:$24 sps:$4 sm:$0xff]  }
  0x61   :  { %v145_v27 = vpack.c.bf16 %v132_v17, %v132_v17  ;;  %v240_v35 = vunpack.c.l.b16 %v144_v26  ;;  %509 = vmatprep.subr.bf16.mxu0 %v1782_v20  ;;  %vm253_vm5 = vcmask 1046534   ;;  %vm255_vm6 = vcmask 1047559   ;;  %v1821_v59 = vld [vmem:[#allocation7 + $0x120] ss:$8 sps:$4 sm:$0xff]   ;;  %v1799_v61 = vld [vmem:[#allocation5 + $0x74] ss:$24 sps:$4 sm:$0xff]  }
  0x62   :  { %551 = vmatpush1.bf16.msra.mxu1 %v1760_v39  ;;  %v239_v33 = vunpack.c.l.b16 %v143_v25  ;;  %v244_v36 = vsel %vm243_vm0, %v236_v29, %v235_v28  ;;  %v242_v40 = vunpack.c.l.b16 %v146_v30  ;;  %v1824_v63 = vld [vmem:[#allocation7 + $0x130] ss:$8 sps:$4 sm:$0xff]   ;;  %v1802_v2 = vld [vmem:[#allocation5 + $0xa4] ss:$24 sps:$4 sm:$0xff]   ;;  %v1827_v4 = vld [vmem:[#allocation7 + $0x140] ss:$8 sps:$4 sm:$0xff]  }
  0x63   :  { %552 = vmatprep.subr.bf16.mxu1 %v1761_v49  ;;  %v241_v38 = vunpack.c.l.b16 %v145_v27  ;;  %v246_v39 = vsel %vm245_vm1, %v237_v31, %v244_v36  ;;  %v1815_v49 = vld [vmem:[#allocation7 + $0x100] ss:$8 sps:$4 sm:$0xff]   ;;  %v1832_v5 = vld [vmem:[#allocation7 + $0x154] ss:$8 sps:$4 sm:$0xff]   ;;  %v1830_v7 = vld [vmem:[#allocation7 + $0x150] ss:$8 sps:$4 sm:$0xff]  }
  0x64   :  { %v248_v41 = vsel %vm247_vm2, %v238_v32, %v246_v39  ;;  %510 = vmatpush1.bf16.msra.mxu0 %v1784_v34  ;;  %v1800_v3 = vld [vmem:[#allocation5 + $0xa0] ss:$24 sps:$4 sm:$0xff]   ;;  %v1835_v8 = vld [vmem:[#allocation7 + $0x164] ss:$8 sps:$4 sm:$0xff]   ;;  %v1841_v12 = vld [vmem:[#allocation7 + $0x174] ss:$8 sps:$4 sm:$0xff]  }
  0x65   :  { %v250_v42 = vsel %vm249_vm3, %v239_v33, %v248_v41  ;;  %511 = vmatprep.subr.bf16.mxu0 %v1785_v37  ;;  %v1808_v9 = vld [vmem:[#allocation5 + $0x104] ss:$24 sps:$4 sm:$0xff]   ;;  %v1806_v10 = vld [vmem:[#allocation5 + $0x100] ss:$24 sps:$4 sm:$0xff]   ;;  %v1811_v13 = vld [vmem:[#allocation5 + $0x134] ss:$24 sps:$4 sm:$0xff]  }
  0x66   :  { %553 = vmatpush1.bf16.msra.mxu1 %v1763_v1  ;;  %v252_v44 = vsel %vm251_vm4, %v240_v35, %v250_v42  ;;  %v1829_v1 = vld [vmem:[#allocation7 + $0x144] ss:$8 sps:$4 sm:$0xff]   ;;  %v1833_v11 = vld [vmem:[#allocation7 + $0x160] ss:$8 sps:$4 sm:$0xff]   ;;  %v1839_v15 = vld [vmem:[#allocation7 + $0x170] ss:$8 sps:$4 sm:$0xff]  }
  0x67   :  { %554 = vmatprep.subr.bf16.mxu1 %v1767_v6  ;;  %v254_v46 = vsel %vm253_vm5, %v241_v38, %v252_v44  ;;  %v1803_v6 = vld [vmem:[#allocation5 + $0xd0] ss:$24 sps:$4 sm:$0xff]   ;;  %v1847_v16 = vld [vmem:[#allocation7 + $0x184] ss:$8 sps:$4 sm:$0xff]   ;;  %v1812_v19 = vld [vmem:[#allocation5 + $0x160] ss:$24 sps:$4 sm:$0xff]  }
  0x68   :  { %v256_v48 = vsel %vm255_vm6, %v242_v40, %v254_v46  ;;  %512 = vmatpush1.bf16.msra.mxu0 %v1787_v43  ;;  %v1809_v14 = vld [vmem:[#allocation5 + $0x130] ss:$24 sps:$4 sm:$0xff]   ;;  %v1814_v17 = vld [vmem:[#allocation5 + $0x164] ss:$24 sps:$4 sm:$0xff]  }
  0x69   :  { %v2205_v51 = vpack.c.b16 %v256_v48, %v256_v48  ;;  %513 = vmatprep.subr.bf16.mxu0 %v1788_v45  ;;  %v1845_v18 = vld [vmem:[#allocation7 + $0x180] ss:$8 sps:$4 sm:$0xff]   ;;  %v1853_v20 = vld [vmem:[#allocation7 + $0x194] ss:$8 sps:$4 sm:$0xff]   ;;  %v1851_v22 = vld [vmem:[#allocation7 + $0x190] ss:$8 sps:$4 sm:$0xff]  }
  0x6a   :  { %555 = vmatpush1.bf16.msra.mxu1 %v1769_v21  ;;  %v1838_v21 = vld [vmem:[#allocation7 + $0x4] ss:$8 sps:$4 sm:$0xff]   ;;  %v1836_v23 = vld [vmem:[#allocation7] ss:$8 sps:$4 sm:$0xff]   ;;  %v1844_v25 = vld [vmem:[#allocation7 + $0x14] ss:$8 sps:$4 sm:$0xff]  }
  0x6b   :  { %1263 = vmatprep.subr.bf16.mxu1 %v1817_v50  ;;  %v1859_v24 = vld [vmem:[#allocation7 + $0x1a4] ss:$8 sps:$4 sm:$0xff]   ;;  %v1857_v26 = vld [vmem:[#allocation7 + $0x1a0] ss:$8 sps:$4 sm:$0xff]   ;;  %v1842_v27 = vld [vmem:[#allocation7 + $0x10] ss:$8 sps:$4 sm:$0xff]  }
  0x6c   :  { %514 = vmatpush1.bf16.msra.mxu0 %v1790_v47  ;;  %v1865_v28 = vld [vmem:[#allocation7 + $0x1b4] ss:$8 sps:$4 sm:$0xff]   ;;  %v1850_v29 = vld [vmem:[#allocation7 + $0x24] ss:$8 sps:$4 sm:$0xff]   ;;  %v1863_v30 = vld [vmem:[#allocation7 + $0x1b0] ss:$8 sps:$4 sm:$0xff]  }
  0x6d   :  { %573 = vmatmul.mubr.bf16.vlgmr.msra.gmra.mrb[0].mxu1 %v2205_v51  ;;  %581 = vmatprep.subr.bf16.mxu0 %v1793_v52  ;;  %v1848_v31 = vld [vmem:[#allocation7 + $0x20] ss:$8 sps:$4 sm:$0xff]   ;;  %v1871_v32 = vld [vmem:[#allocation7 + $0x1c4] ss:$8 sps:$4 sm:$0xff]   ;;  %v1856_v33 = vld [vmem:[#allocation7 + $0x34] ss:$8 sps:$4 sm:$0xff]  }
  0x6e   :  { %1264 = vmatpush1.bf16.msra.mxu1 %v1815_v49  ;;  %v1869_v34 = vld [vmem:[#allocation7 + $0x1c0] ss:$8 sps:$4 sm:$0xff]   ;;  %v1854_v35 = vld [vmem:[#allocation7 + $0x30] ss:$8 sps:$4 sm:$0xff]   ;;  %v1877_v36 = vld [vmem:[#allocation7 + $0x1d4] ss:$8 sps:$4 sm:$0xff]  }
  0x6f   :  { %1265 = vmatprep.subr.bf16.mxu1 %v1820_v53  ;;  %532 = vmatmul.mubr.bf16.vlgmr.msra.gmra.mrb[0].mxu0 %v2205_v51  ;;  %v1862_v37 = vld [vmem:[#allocation7 + $0x44] ss:$8 sps:$4 sm:$0xff]   ;;  %v1875_v38 = vld [vmem:[#allocation7 + $0x1d0] ss:$8 sps:$4 sm:$0xff]   ;;  %v1860_v39 = vld [vmem:[#allocation7 + $0x40] ss:$8 sps:$4 sm:$0xff]  }
  0x70   :  { %582 = vmatpush1.bf16.msra.mxu0 %v1791_v54  ;;  %613 = vmatprep.mubr.bf16.mxu0 %v2103_v0  ;;  %v1805_v0 = vld [vmem:[#allocation5 + $0xd4] ss:$24 sps:$4 sm:$0xff]   ;;  %v1866_v41 = vld [vmem:[#allocation7 + $0x50] ss:$8 sps:$4 sm:$0xff]   ;;  %v1872_v43 = vld [vmem:[#allocation7 + $0x60] ss:$8 sps:$4 sm:$0xff]  }
  0x71   :  { %583 = vmatprep.subr.bf16.mxu0 %v1796_v56  ;;  %v1868_v40 = vld [vmem:[#allocation7 + $0x54] ss:$8 sps:$4 sm:$0xff]   ;;  %v1874_v42 = vld [vmem:[#allocation7 + $0x64] ss:$8 sps:$4 sm:$0xff]   ;;  %v1878_v46 = vld [vmem:[#allocation7 + $0x70] ss:$8 sps:$4 sm:$0xff]  }
  0x72   :  { %1266 = vmatpush1.bf16.msra.mxu1 %v1818_v55  ;;  %v1880_v44 = vld [vmem:[#allocation7 + $0x74] ss:$8 sps:$4 sm:$0xff]   ;;  %v1883_v45 = vld [vmem:[#allocation7 + $0x1e4] ss:$8 sps:$4 sm:$0xff]   ;;  %v1881_v47 = vld [vmem:[#allocation7 + $0x1e0] ss:$8 sps:$4 sm:$0xff]  }
  0x73   :  { %1267 = vmatprep.subr.bf16.mxu1 %v1823_v57  ;;  %v1886_v48 = vld [vmem:[#allocation7 + $0x84] ss:$8 sps:$4 sm:$0xff]   ;;  %v1889_v49 = vld [vmem:[#allocation7 + $0x1f4] ss:$8 sps:$4 sm:$0xff]   ;;  %v1884_v50 = vld [vmem:[#allocation7 + $0x80] ss:$8 sps:$4 sm:$0xff]  }
  0x74   :  { %584 = vmatpush1.bf16.msra.mxu0 %v1794_v58  ;;  %v1890_v52 = vld [vmem:[#allocation7 + $0x90] ss:$8 sps:$4 sm:$0xff]   ;;  %v1892_v53 = vld [vmem:[#allocation7 + $0x94] ss:$8 sps:$4 sm:$0xff]   ;;  %v1895_v54 = vld [vmem:[#allocation7 + $0x204] ss:$8 sps:$4 sm:$0xff]  }
  0x75   :  { %585 = vmatprep.subr.bf16.mxu0 %v1799_v61  ;;  %v1896_v55 = vld [vmem:[#allocation7 + $0xa0] ss:$8 sps:$4 sm:$0xff]   ;;  %v1898_v56 = vld [vmem:[#allocation7 + $0xa4] ss:$8 sps:$4 sm:$0xff]   ;;  %v1902_v57 = vld [vmem:[#allocation7 + $0xb0] ss:$8 sps:$4 sm:$0xff]  }
  0x76   :  { %1268 = vmatpush1.bf16.msra.mxu1 %v1821_v59  ;;  %v1904_v58 = vld [vmem:[#allocation7 + $0xb4] ss:$8 sps:$4 sm:$0xff]   ;;  %v1908_v59 = vld [vmem:[#allocation7 + $0xc0] ss:$8 sps:$4 sm:$0xff]   ;;  %v1914_v61 = vld [vmem:[#allocation7 + $0xd0] ss:$8 sps:$4 sm:$0xff]  }
  0x77   :  { %1269 = vmatprep.subr.bf16.mxu1 %v1826_v60  ;;  %v1910_v60 = vld [vmem:[#allocation7 + $0xc4] ss:$8 sps:$4 sm:$0xff]  }
  0x78   :  { %586 = vmatpush1.bf16.msra.mxu0 %v1797_v62  ;;  %v1916_v62 = vld [vmem:[#allocation7 + $0xd4] ss:$8 sps:$4 sm:$0xff]  }
  0x79   :  { %587 = vmatprep.subr.bf16.mxu0 %v1802_v2  ;;  %v1926_v2 = vld [vmem:[#allocation7 + $0xf0] ss:$8 sps:$4 sm:$0xff]  }
  0x7a   :  { %1270 = vmatpush1.bf16.msra.mxu1 %v1824_v63  ;;  %v1920_v63 = vld [vmem:[#allocation7 + $0xe0] ss:$8 sps:$4 sm:$0xff]  }
  0x7b   :  { %1271 = vmatprep.subr.bf16.mxu1 %v1829_v1  ;;  %v1922_v1 = vld [vmem:[#allocation7 + $0xe4] ss:$8 sps:$4 sm:$0xff]  }
  0x7c   :  { %588 = vmatpush1.bf16.msra.mxu0 %v1800_v3  ;;  %v1928_v3 = vld [vmem:[#allocation7 + $0xf4] ss:$8 sps:$4 sm:$0xff]  }
  0x7d   :  { %589 = vmatprep.subr.bf16.mxu0 %v1805_v0 }
  0x7e   :  { %1272 = vmatpush1.bf16.msra.mxu1 %v1827_v4  ;;  %v197_v4 = vlaneseq }
  0x7f   :  { %1273 = vmatprep.subr.bf16.mxu1 %v1832_v5 }
  0x80   :  { %590 = vmatpush1.bf16.msra.mxu0 %v1803_v6  ;;  %v2211_v5 = vshrl.u32 %v197_v4, 7  ;;  %v2217_v6 = vld [vmem:[%s2258_s2] sm:$0x3f] }
  0x81   :  { %591 = vmatprep.subr.bf16.mxu0 %v1808_v9  ;;  %v1947_v4 = vld [vmem:[#allocation7 + $0x2c0] ss:$8 sps:$4 sm:$0xff]  }
  0x82   :  { %1274 = vmatpush1.bf16.msra.mxu1 %v1830_v7  ;;  %v207_v0 = vsub.s32 2, %v2211_v5  ;;  %v211_v7 = vsub.s32 3, %v2211_v5 }
  0x83   :  { %1275 = vmatprep.subr.bf16.mxu1 %v1835_v8 }
  0x84   :  { %592 = vmatpush1.bf16.msra.mxu0 %v1806_v10  ;;  %v208_v8 = vrot.slane %v2217_v6, %v207_v0  ;;  %v212_v9 = vrot.slane %v2217_v6, %v211_v7  ;;  %v199_v10 = vsub.s32 0, %v2211_v5  ;;  %v215_v0 = vsub.s32 4, %v2211_v5  ;;  %v1952_v7 = vld [vmem:[#allocation7 + $0x2d4] ss:$8 sps:$4 sm:$0xff]  }
  0x85   :  { %593 = vmatprep.subr.bf16.mxu0 %v1811_v13 }
  0x86   :  { %1276 = vmatpush1.bf16.msra.mxu1 %v1833_v11  ;;  %v203_v11 = vsub.s32 1, %v2211_v5 }
  0x87   :  { %1277 = vmatprep.subr.bf16.mxu1 %v1841_v12 }
  0x88   :  { %594 = vmatpush1.bf16.msra.mxu0 %v1809_v14 }
  0x89   :  { %595 = vmatprep.subr.bf16.mxu0 %v1814_v17  ;;  %v200_v17 = vrot.slane %v2217_v6, %v199_v10 }
  0x8a   :  { %1278 = vmatpush1.bf16.msra.mxu1 %v1839_v15 }
  0x8b   :  { %1279 = vmatprep.subr.bf16.mxu1 %v1847_v16 }
  0x8c   :  { %596 = vmatpush1.bf16.msra.mxu0 %v1812_v19 }
  0x8d   :  { %1222 = vmatprep.subr.bf16.mxu0 %v1838_v21 }
  0x8e   :  { %1280 = vmatpush1.bf16.msra.mxu1 %v1845_v18 }
  0x8f   :  { %1281 = vmatprep.subr.bf16.mxu1 %v1853_v20  ;;  %614 = vmatmul.mubr.bf16.vlgmr.msra.gmra.mrb[4].mxu0 %v2205_v51  ;;  %v1887_v51 = vld [vmem:[#allocation7 + $0x1f0] ss:$8 sps:$4 sm:$0xff]   ;;  %v204_v20 = vrot.slane %v2217_v6, %v203_v11 }
  0x90   :  { %1223 = vmatpush1.bf16.msra.mxu0 %v1836_v23 }
  0x91   :  { %1224 = vmatprep.subr.bf16.mxu0 %v1844_v25 }
  0x92   :  { %1282 = vmatpush1.bf16.msra.mxu1 %v1851_v22 }
  0x93   :  { %1283 = vmatprep.subr.bf16.mxu1 %v1859_v24  ;;  %v1893_v24 = vld [vmem:[#allocation7 + $0x200] ss:$8 sps:$4 sm:$0xff]  }
  0x94   :  { %1225 = vmatpush1.bf16.msra.mxu0 %v1842_v27 }
  0x95   :  { %1226 = vmatprep.subr.bf16.mxu0 %v1850_v29 }
  0x96   :  { %1284 = vmatpush1.bf16.msra.mxu1 %v1857_v26 }
  0x97   :  { %1285 = vmatprep.subr.bf16.mxu1 %v1865_v28  ;;  %v1901_v28 = vld [vmem:[#allocation7 + $0x214] ss:$8 sps:$4 sm:$0xff]  }
  0x98   :  { %1227 = vmatpush1.bf16.msra.mxu0 %v1848_v31 }
  0x99   :  { %1228 = vmatprep.subr.bf16.mxu0 %v1856_v33 }
  0x9a   :  { %1286 = vmatpush1.bf16.msra.mxu1 %v1863_v30 }
  0x9b   :  { %1287 = vmatprep.subr.bf16.mxu1 %v1871_v32 }
  0x9c   :  { %1229 = vmatpush1.bf16.msra.mxu0 %v1854_v35 }
  0x9d   :  { %1230 = vmatprep.subr.bf16.mxu0 %v1862_v37 }
  0x9e   :  { %1288 = vmatpush1.bf16.msra.mxu1 %v1869_v34  ;;  %v1899_v34 = vld [vmem:[#allocation7 + $0x210] ss:$8 sps:$4 sm:$0xff]  }
  0x9f   :  { %1289 = vmatprep.subr.bf16.mxu1 %v1877_v36  ;;  %v1907_v36 = vld [vmem:[#allocation7 + $0x224] ss:$8 sps:$4 sm:$0xff]  }
  0xa0   :  { %1231 = vmatpush1.bf16.msra.mxu0 %v1860_v39  ;;  %v1913_v39 = vld [vmem:[#allocation7 + $0x234] ss:$8 sps:$4 sm:$0xff]  }
  0xa1   :  { %1232 = vmatprep.subr.bf16.mxu0 %v1868_v40  ;;  %v1911_v40 = vld [vmem:[#allocation7 + $0x230] ss:$8 sps:$4 sm:$0xff]  }
  0xa2   :  { %1290 = vmatpush1.bf16.msra.mxu1 %v1875_v38  ;;  %v1905_v38 = vld [vmem:[#allocation7 + $0x220] ss:$8 sps:$4 sm:$0xff]  }
  0xa3   :  { %1291 = vmatprep.subr.bf16.mxu1 %v1883_v45  ;;  %v1931_v45 = vld [vmem:[#allocation7 + $0x264] ss:$8 sps:$4 sm:$0xff]  }
  0xa4   :  { %1233 = vmatpush1.bf16.msra.mxu0 %v1866_v41  ;;  %v1919_v41 = vld [vmem:[#allocation7 + $0x244] ss:$8 sps:$4 sm:$0xff]  }
  0xa5   :  { %1234 = vmatprep.subr.bf16.mxu0 %v1874_v42  ;;  %v1917_v42 = vld [vmem:[#allocation7 + $0x240] ss:$8 sps:$4 sm:$0xff]  }
  0xa6   :  { %1292 = vmatpush1.bf16.msra.mxu1 %v1881_v47  ;;  %v1934_v47 = vld [vmem:[#allocation7 + $0x274] ss:$8 sps:$4 sm:$0xff]  }
  0xa7   :  { %1293 = vmatprep.subr.bf16.mxu1 %v1889_v49  ;;  %v1932_v49 = vld [vmem:[#allocation7 + $0x270] ss:$8 sps:$4 sm:$0xff]  }
  0xa8   :  { %1235 = vmatpush1.bf16.msra.mxu0 %v1872_v43  ;;  %v1925_v43 = vld [vmem:[#allocation7 + $0x254] ss:$8 sps:$4 sm:$0xff]  }
  0xa9   :  { %1236 = vmatprep.subr.bf16.mxu0 %v1880_v44  ;;  %v1923_v44 = vld [vmem:[#allocation7 + $0x250] ss:$8 sps:$4 sm:$0xff]  }
  0xaa   :  { %1294 = vmatpush1.bf16.msra.mxu1 %v1887_v51 }
  0xab   :  { %1304 = vmatprep.subr.bf16.mxu1 %v1895_v54 }
  0xac   :  { %1237 = vmatpush1.bf16.msra.mxu0 %v1878_v46  ;;  %v1929_v46 = vld [vmem:[#allocation7 + $0x260] ss:$8 sps:$4 sm:$0xff]  }
  0xad   :  { %1238 = vmatprep.subr.bf16.mxu0 %v1886_v48  ;;  %v219_v48 = vsub.s32 5, %v2211_v5 }
  0xaf   :  { %v220_v51 = vrot.slane %v2217_v6, %v219_v48 }
  0xb0   :  { %1239 = vmatpush1.bf16.msra.mxu0 %v1884_v50  ;;  %v1937_v50 = vld [vmem:[#allocation7 + $0x284] ss:$8 sps:$4 sm:$0xff]  }
  0xb1   :  { %1240 = vmatprep.subr.bf16.mxu0 %v1892_v53  ;;  %v1935_v53 = vld [vmem:[#allocation7 + $0x280] ss:$8 sps:$4 sm:$0xff]  }
  0xb4   :  { %1241 = vmatpush1.bf16.msra.mxu0 %v1890_v52 }
  0xb5   :  { %1242 = vmatprep.subr.bf16.mxu0 %v1898_v56 }
  0xb8   :  { %1243 = vmatpush1.bf16.msra.mxu0 %v1896_v55  ;;  %v1940_v55 = vld [vmem:[#allocation7 + $0x294] ss:$8 sps:$4 sm:$0xff]  }
  0xb9   :  { %1244 = vmatprep.subr.bf16.mxu0 %v1904_v58 }
  0xbc   :  { %1245 = vmatpush1.bf16.msra.mxu0 %v1902_v57 }
  0xbd   :  { %1246 = vmatprep.subr.bf16.mxu0 %v1910_v60  ;;  %v1938_v60 = vld [vmem:[#allocation7 + $0x290] ss:$8 sps:$4 sm:$0xff]  }
  0xc0   :  { %1247 = vmatpush1.bf16.msra.mxu0 %v1908_v59 }
  0xc1   :  { %1248 = vmatprep.subr.bf16.mxu0 %v1916_v62 }
  0xc4   :  { %1249 = vmatpush1.bf16.msra.mxu0 %v1914_v61  ;;  %v1943_v61 = vld [vmem:[#allocation7 + $0x2a4] ss:$8 sps:$4 sm:$0xff]  }
  0xc5   :  { %1250 = vmatprep.subr.bf16.mxu0 %v1922_v1  ;;  %v1946_v1 = vld [vmem:[#allocation7 + $0x2b4] ss:$8 sps:$4 sm:$0xff]  }
  0xc8   :  { %1251 = vmatpush1.bf16.msra.mxu0 %v1920_v63  ;;  %v1941_v63 = vld [vmem:[#allocation7 + $0x2a0] ss:$8 sps:$4 sm:$0xff]  }
  0xc9   :  { %1252 = vmatprep.subr.bf16.mxu0 %v1928_v3  ;;  %v1949_v3 = vld [vmem:[#allocation7 + $0x2c4] ss:$8 sps:$4 sm:$0xff]  }
  0xcc   :  { %1253 = vmatpush1.bf16.msra.mxu0 %v1926_v2  ;;  %v1944_v2 = vld [vmem:[#allocation7 + $0x2b0] ss:$8 sps:$4 sm:$0xff]  }
 0x140   :  { %v574_v12 = vpop.f32.mrb[0].mxu1 }
 0x141   :  { %v575_v13 = vadd.f32 %v574_v12, %v208_v8  ;;  %v576_v14 = vpop.f32.mrb[1].mxu1  ;;  %v1950_v8 = vld [vmem:[#allocation7 + $0x2d0] ss:$8 sps:$4 sm:$0xff]   ;;  %v1955_v12 = vld [vmem:[#allocation7 + $0x2e4] ss:$8 sps:$4 sm:$0xff]  }
 0x142   :  { %v577_v15 = vadd.f32 %v576_v14, %v212_v9  ;;  %v578_v16 = vpop.f32.mrb[2].mxu1  ;;  %v533_v22 = vpop.f32.mrb[0].mxu0  ;;  %v216_v9 = vrot.slane %v2217_v6, %v215_v0  ;;  %v1962_v6 = vld [vmem:[#allocation8 + $0x8] sm:$0xff]  }
 0x143   :  { %v624_v18 = vmax.f32 %v575_v13, 0.0  ;;  %v579_v19 = vpop.f32.mrb[3].mxu1  ;;  %v534_v25 = vadd.f32 %v533_v22, %v200_v17  ;;  %v535_v26 = vpop.f32.mrb[1].mxu0  ;;  %v1953_v13 = vld [vmem:[#allocation7 + $0x2e0] ss:$8 sps:$4 sm:$0xff]   ;;  %v1963_v22 = vld [vmem:[#allocation8 + $0x50] sm:$0xff]  }
 0x144   :  { %v625_v21 = vmax.f32 %v577_v15, 0.0  ;;  %v536_v29 = vadd.f32 %v535_v26, %v204_v20  ;;  %v537_v30 = vpop.f32.mrb[2].mxu0  ;;  %v1958_v15 = vld [vmem:[#allocation7 + $0x2f4] ss:$8 sps:$4 sm:$0xff]   ;;  %v1956_v16 = vld [vmem:[#allocation7 + $0x2f0] ss:$8 sps:$4 sm:$0xff]  }
 0x145   :  { %v630_v27 = vpack.c.bf16 %v624_v18, %v624_v18  ;;  %v622_v31 = vmax.f32 %v534_v25, 0.0  ;;  %v538_v32 = vpop.f32.mrb[3].mxu0  ;;  %v1959_v19 = vld [vmem:[#allocation8 + $0x40] sm:$0xff]   ;;  %v1966_v25 = vld [vmem:[#allocation8 + $0x18] sm:$0xff]   ;;  %v1971_v30 = vld [vmem:[#allocation8 + $0x70] sm:$0xff]  }
 0x146   :  { %v631_v23 = vpack.c.bf16 %v625_v21, %v625_v21  ;;  %v623_v33 = vmax.f32 %v536_v29, 0.0  ;;  %v1960_v20 = vld [vmem:[#allocation8] sm:$0xff]   ;;  %v1961_v21 = vld [vmem:[#allocation8 + $0x48] sm:$0xff]   ;;  %1701 = vmatprep.subr.bf16.mxu0 %v1959_v19  ;;  %v1973_v32 = vld [vmem:[#allocation8 + $0x78] sm:$0xff]  }
 0x147   :  { %v628_v35 = vpack.c.bf16 %v622_v31, %v622_v31  ;;  %v1967_v26 = vld [vmem:[#allocation8 + $0x60] sm:$0xff]   ;;  %v1970_v29 = vld [vmem:[#allocation8 + $0x28] sm:$0xff]   ;;  %v1972_v31 = vld [vmem:[#allocation8 + $0x30] sm:$0xff]  }
 0x148   :  { %1295 = vmatprep.mubr.bf16.mxu1 %v631_v23  ;;  %v629_v37 = vpack.c.bf16 %v623_v33, %v623_v33  ;;  %v1964_v23 = vld [vmem:[#allocation8 + $0x10] sm:$0xff]   ;;  %v1974_v33 = vld [vmem:[#allocation8 + $0x38] sm:$0xff]  }
 0x149   :  { %1296 = vmatmul.mubr.bf16.vlgmr.msra.gmra.mrb[4].mxu1 %v630_v27  ;;  %v1968_v27 = vld [vmem:[#allocation8 + $0x20] sm:$0xff]  }
 0x14a   :  { %1305 = vmatpush1.bf16.msra.mxu1 %v1893_v24  ;;  %1254 = vmatprep.mubr.bf16.mxu0 %v629_v37  ;;  %v1965_v24 = vld [vmem:[#allocation8 + $0x58] sm:$0xff]  }
 0x14b   :  { %1306 = vmatprep.subr.bf16.mxu1 %v1901_v28  ;;  %1255 = vmatmul.mubr.bf16.vlgmr.msra.gmra.mrb[8].mxu0 %v628_v35  ;;  %v1969_v28 = vld [vmem:[#allocation8 + $0x68] sm:$0xff]  }
 0x14c   :  { %1702 = vmatpush3.bf16.msra.mxu0 %v1960_v20 }
 0x14d   :  { %1703 = vmatprep.subr.bf16.mxu0 %v1961_v21 }
 0x14e   :  { %1307 = vmatpush1.bf16.msra.mxu1 %v1899_v34  ;;  %v730_v34 = vld [vmem:[%s2260_s4] sm:$0x3] }
 0x14f   :  { %1308 = vmatprep.subr.bf16.mxu1 %v1907_v36  ;;  %v735_v35 = vrot.slane %v730_v34, %v199_v10 }
 0x150   :  { %1704 = vmatpush3.bf16.msra.mxu0 %v1962_v6 }
 0x151   :  { %1705 = vmatprep.subr.bf16.mxu0 %v1963_v22 }
 0x152   :  { %1309 = vmatpush1.bf16.msra.mxu1 %v1905_v38 }
 0x153   :  { %1310 = vmatprep.subr.bf16.mxu1 %v1913_v39 }
 0x154   :  { %1706 = vmatpush3.bf16.msra.mxu0 %v1964_v23 }
 0x155   :  { %1707 = vmatprep.subr.bf16.mxu0 %v1965_v24 }
 0x156   :  { %1311 = vmatpush1.bf16.msra.mxu1 %v1911_v40 }
 0x157   :  { %1312 = vmatprep.subr.bf16.mxu1 %v1919_v41  ;;  %v739_v41 = vrot.slane %v730_v34, %v203_v11 }
 0x158   :  { %1708 = vmatpush3.bf16.msra.mxu0 %v1966_v25 }
 0x159   :  { %1709 = vmatprep.subr.bf16.mxu0 %v1967_v26 }
 0x15a   :  { %1313 = vmatpush1.bf16.msra.mxu1 %v1917_v42 }
 0x15b   :  { %1314 = vmatprep.subr.bf16.mxu1 %v1925_v43 }
 0x15c   :  { %1710 = vmatpush3.bf16.msra.mxu0 %v1968_v27 }
 0x15d   :  { %1711 = vmatprep.subr.bf16.mxu0 %v1969_v28 }
 0x15e   :  { %1315 = vmatpush1.bf16.msra.mxu1 %v1923_v44 }
 0x15f   :  { %1316 = vmatprep.subr.bf16.mxu1 %v1931_v45 }
 0x160   :  { %1712 = vmatpush3.bf16.msra.mxu0 %v1970_v29 }
 0x161   :  { %1713 = vmatprep.subr.bf16.mxu0 %v1971_v30 }
 0x162   :  { %1317 = vmatpush1.bf16.msra.mxu1 %v1929_v46  ;;  %v615_v52 = vpop.f32.mrb[4].mxu0 }
 0x163   :  { %1318 = vmatprep.subr.bf16.mxu1 %v1934_v47  ;;  %v617_v54 = vpop.f32.mrb[5].mxu0  ;;  %v616_v14 = vadd.f32 %v615_v52, %v216_v9 }
 0x164   :  { %v618_v56 = vadd.f32 %v617_v54, %v220_v51  ;;  %v619_v57 = vpop.f32.mrb[6].mxu0  ;;  %1714 = vmatpush3.bf16.msra.mxu0 %v1972_v31  ;;  %v1684_v51 = vld [vmem:[%s2262_s6] ss:$0 sm:$0xff] }
 0x165   :  { %v620_v58 = vpop.f32.mrb[7].mxu0  ;;  %v626_v17 = vmax.f32 %v616_v14, 0.0  ;;  %1715 = vmatprep.subr.bf16.mxu0 %v1973_v32 }
 0x166   :  { %1319 = vmatpush1.bf16.msra.mxu1 %v1932_v49  ;;  %v627_v59 = vmax.f32 %v618_v56, 0.0 }
 0x167   :  { %1320 = vmatprep.subr.bf16.mxu1 %v1937_v50  ;;  %v632_v18 = vpack.c.bf16 %v626_v17, %v626_v17 }
 0x168   :  { %v633_v62 = vpack.c.bf16 %v627_v59, %v627_v59  ;;  %1716 = vmatpush3.bf16.msra.mxu0 %v1974_v33 }
 0x16a   :  { %1321 = vmatpush1.bf16.msra.mxu1 %v1935_v53  ;;  %1336 = vmatprep.mubr.bf16.mxu1 %v633_v62 }
 0x16b   :  { %1322 = vmatprep.subr.bf16.mxu1 %v1940_v55 }
 0x16e   :  { %1323 = vmatpush1.bf16.msra.mxu1 %v1938_v60 }
 0x16f   :  { %1324 = vmatprep.subr.bf16.mxu1 %v1943_v61 }
 0x172   :  { %1325 = vmatpush1.bf16.msra.mxu1 %v1941_v63 }
 0x173   :  { %1326 = vmatprep.subr.bf16.mxu1 %v1946_v1 }
 0x176   :  { %1327 = vmatpush1.bf16.msra.mxu1 %v1944_v2 }
 0x177   :  { %1328 = vmatprep.subr.bf16.mxu1 %v1949_v3 }
 0x17a   :  { %1329 = vmatpush1.bf16.msra.mxu1 %v1947_v4 }
 0x17b   :  { %1330 = vmatprep.subr.bf16.mxu1 %v1952_v7 }
 0x17e   :  { %1331 = vmatpush1.bf16.msra.mxu1 %v1950_v8 }
 0x17f   :  { %1332 = vmatprep.subr.bf16.mxu1 %v1955_v12 }
 0x182   :  { %1333 = vmatpush1.bf16.msra.mxu1 %v1953_v13 }
 0x183   :  { %1334 = vmatprep.subr.bf16.mxu1 %v1958_v15 }
 0x186   :  { %1335 = vmatpush1.bf16.msra.mxu1 %v1956_v16 }
 0x189   :  { %1337 = vmatmul.mubr.bf16.vlgmr.msra.gmra.mrb[4].mxu1 %v632_v18 }
 0x21e   :  { %v1256_v36 = vpop.f32.mrb[8].mxu0 }
 0x21f   :  { %v1257_v37 = vadd.f32 %v1256_v36, %v735_v35  ;;  %v1258_v38 = vpop.f32.mrb[9].mxu0 }
 0x220   :  { %v1260_v39 = vpop.f32.mrb[10].mxu0  ;;  %v1259_v42 = vadd.f32 %v1258_v38, %v739_v41 }
 0x221   :  { %v1261_v40 = vpop.f32.mrb[11].mxu0 }
 0x25c   :  { %v1338_v43 = vpop.f32.mrb[4].mxu1 }
 0x25d   :  { %v1724_v44 = vadd.f32 %v1338_v43, %v1257_v37  ;;  %v1340_v45 = vpop.f32.mrb[5].mxu1 }
 0x25e   :  { %v1726_v46 = vadd.f32 %v1340_v45, %v1259_v42  ;;  %v1342_v47 = vpop.f32.mrb[6].mxu1 }
 0x25f   :  { %v1343_v48 = vpop.f32.mrb[7].mxu1  ;;  %v1345_v50 = vpack.c.bf16 %v1724_v44, %v1724_v44 }
 0x260   :  { %v1346_v49 = vpack.c.bf16 %v1726_v46, %v1726_v46 }
 0x262   :  { %1514 = vmatprep.mubr.bf16.mxu0 %v1346_v49 }
 0x263   :  { %1515 = vmatmul.mubr.bf16.vlgmr.msra.gmra.mrb[12].mxu0 %v1345_v50 }
 0x336   :  { %v1717_v10 = vpop.f32.mrb[12].mxu0 }
 0x337   :  { %v1718_v52 = vpop.f32.mrb[13].mxu0 }
 0x338   :  { %v1719_v5 = vadd.f32 %v1718_v52, %v1717_v10  ;;  %v1720_v11 = vpop.f32.mrb[14].mxu0 }
 0x339   :  { %v1721_v53 = vpop.f32.mrb[15].mxu0 }
 0x33a   :  { %v1517_v54 = vadd.f32 %v1719_v5, %v1684_v51 }
 0x33c   :  { %1522 = vst [vmem:[#allocation10] sm:$0xff] %v1517_v54 }
 0x33d   :  { %2074 = shalt.err (!%p2071_p8)
}
 0x33e   :  { %s2075_s6 = scalar_lea.hbm %s2263_s7, 128 }
 0x33f   :  { %p2076_p9 = scmp.ne.s32.totalorder %s2263_s7, %s2075_s6  ;;  %p2079_p10 = scmp.lt.u32.totalorder %s2075_s6, %s2263_s7 }
 0x341   :  { %p2081_p11 = pnand %p2079_p10, %p2076_p9 }
 0x343   :  { %2084 = shalt.err (!%p2081_p11)
}
 0x344   :  { %1532 = dma.vmem_to_hbm [thread:$0]  %s1530_s9, 128, %s2263_s7, [#allocation4]  }
 0x345   :  { %2091 = dma.done.wait [#allocation4], 128  }
 0x346   :  { %2092 = vsyncadd [#allocation4], 4294967168 }
 0x347   :  { %1536 = vsyncpa [#allocation3], 1 }
 0x348   :  { %1537 = vsyncpa [#allocation6], 1 }
 0x349   :  { %1538 = vsyncpa [#allocation9], 1 }
 0x34a   :  { %1539 = vsyncpa [#allocation4], 1 }

</bundles_post_ra>
